<compile_context>
chip_gen: v5e
topology: v5e:2x2
jax: 0.10.0
libtpu: 0.0.40
codegen_flags: <defaults>
</compile_context>

<pallas_src>
import functools

import numpy as np
import jax
import jax.numpy as jnp
from jax import lax
from jax.experimental import pallas as pl
from jax.experimental.pallas import tpu as pltpu


def cosine_beta_schedule_discrete(timesteps, s=0.008):
    """Discrete cosine schedule (DiGress). Returns betas of length timesteps+1."""
    steps = timesteps + 2
    x = np.linspace(0, steps, steps)
    alphas_cumprod = np.cos(0.5 * np.pi * ((x / steps) + s) / (1 + s)) ** 2
    alphas_cumprod = alphas_cumprod / alphas_cumprod[0]
    alphas = alphas_cumprod[1:] / alphas_cumprod[:-1]
    betas = 1.0 - alphas
    return np.squeeze(betas).astype(np.float32)


_BATCH_BLOCK = 512   # batch tile when B is large (bounds the (TB, P) one-hot)
_NOGRID_MAX = 1024   # up to this batch size, run a single full-block kernel, no grid


def _fused_lookup_kernel(t_ref, tables_ref, out_ref, *, scale, n_valid):
    """out[b, 0] = betas[idx(b)], out[b, 1] = alphas_bar[idx(b)],
    idx(b) = clamp(round(t[b, 0] * scale), 0, n_valid - 1).

    One-hot masked lane-reduce gather against the lane-resident (2, P) table:
    compare/select on the VPU, lane reduction on the XLU (both have slack here).
    """
    t_int = jnp.round(t_ref[...] * scale).astype(jnp.int32)              # (TB, 1)
    # Clamp instead of silently returning 0 for out-of-range t (PyTorch would
    # raise an indexing error; in-range inputs are unaffected).
    t_int = jnp.clip(t_int, 0, n_valid - 1)
    lane = lax.broadcasted_iota(jnp.int32, (1, tables_ref.shape[1]), 1)   # (1, P)
    mask = lane == t_int                                                  # (TB, P)
    beta = jnp.sum(jnp.where(mask, tables_ref[0:1, :], 0.0),
                   axis=-1, keepdims=True)                                # (TB, 1)
    abar = jnp.sum(jnp.where(mask, tables_ref[1:2, :], 0.0),
                   axis=-1, keepdims=True)                                # (TB, 1)
    out_ref[...] = jnp.concatenate([beta, abar], axis=-1)                 # (TB, 2)


def _build_lookup_call(b_pad, p, scale, n_valid):
    kernel = functools.partial(_fused_lookup_kernel, scale=scale, n_valid=n_valid)
    out_shape = jax.ShapeDtypeStruct((b_pad, 2), jnp.float32)
    if b_pad <= _NOGRID_MAX:
        # Overhead-bound regime: no grid, whole arrays resident in VMEM.
        return pl.pallas_call(
            kernel,
            out_shape=out_shape,
            in_specs=[pl.BlockSpec(memory_space=pltpu.MemorySpace.VMEM),
                      pl.BlockSpec(memory_space=pltpu.MemorySpace.VMEM)],
            out_specs=pl.BlockSpec(memory_space=pltpu.MemorySpace.VMEM),
        )
    # Large-batch path: tile the batch; table block replicated across grid steps.
    grid = (b_pad // _BATCH_BLOCK,)
    return pl.pallas_call(
        kernel,
        out_shape=out_shape,
        grid=grid,
        in_specs=[pl.BlockSpec((_BATCH_BLOCK, 1), lambda i: (i, 0)),
                  pl.BlockSpec((2, p), lambda i: (0, 0))],
        out_specs=pl.BlockSpec((_BATCH_BLOCK, 2), lambda i: (i, 0)),
        compiler_params=pltpu.CompilerParams(
            dimension_semantics=("arbitrary",)),
    )


@functools.partial(jax.jit, static_argnames=("scale", "n_valid", "col"))
def _schedule_lookup(t, tables, *, scale, n_valid, col):
    """Fused schedule lookup. col=0 -> betas, col=1 -> alphas_bar,
    col=None -> (betas, alphas_bar). Output shapes follow t.shape."""
    orig_shape = t.shape
    t_flat = jnp.asarray(t, jnp.float32).reshape(-1, 1)
    b = t_flat.shape[0]
    block = _BATCH_BLOCK if b > _NOGRID_MAX else 8
    b_pad = ((b + block - 1) // block) * block
    if b_pad != b:
        t_flat = jnp.pad(t_flat, ((0, b_pad - b), (0, 0)))
    out = _build_lookup_call(b_pad, tables.shape[1], scale, n_valid)(t_flat, tables)
    out = out[:b]                                                         # (B, 2)
    if col is None:
        return out[:, 0].reshape(orig_shape), out[:, 1].reshape(orig_shape)
    return out[:, col].reshape(orig_shape)


class PredefinedNoiseScheduleDiscrete:
    """JAX/Pallas port of the predefined discrete cosine noise schedule."""

    def __init__(self, timesteps=500):
        self.timesteps = timesteps
        betas_np = cosine_beta_schedule_discrete(timesteps)               # (T+1,)
        alphas_np = 1.0 - np.clip(betas_np, 0.0, 0.9999)
        alphas_bar_np = np.exp(np.cumsum(np.log(alphas_np))).astype(np.float32)
        self.betas = jnp.asarray(betas_np, jnp.float32)
        self.alphas_bar = jnp.asarray(alphas_bar_np, jnp.float32)

        n = betas_np.shape[0]
        pad = (-n) % 128                      # lane-align the lookup table
        tables_np = np.stack([np.pad(betas_np, (0, pad)),
                              np.pad(alphas_bar_np, (0, pad))]).astype(np.float32)
        self._tables = jnp.asarray(tables_np)                             # (2, P)
        self._n_valid = n

    def _prep(self, t_normalized, t_int):
        assert int(t_normalized is None) + int(t_int is None) == 1
        if t_int is None:
            return jnp.asarray(t_normalized, jnp.float32), float(self.timesteps)
        return jnp.asarray(t_int, jnp.float32), 1.0

    def __call__(self, t_normalized=None, t_int=None):
        t, scale = self._prep(t_normalized, t_int)
        return _schedule_lookup(t, self._tables, scale=scale,
                                n_valid=self._n_valid, col=0)

    forward = __call__

    def get_alpha_bar(self, t_normalized=None, t_int=None):
        t, scale = self._prep(t_normalized, t_int)
        return _schedule_lookup(t, self._tables, scale=scale,
                                n_valid=self._n_valid, col=1)

    def get_beta_and_alpha_bar(self, t_normalized=None, t_int=None):
        """Fused: both betas(t) and alphas_bar(t) from a single kernel launch."""
        t, scale = self._prep(t_normalized, t_int)
        return _schedule_lookup(t, self._tables, scale=scale,
                                n_valid=self._n_valid, col=None)


if __name__ == "__main__":
    timesteps = 500
    sched = PredefinedNoiseScheduleDiscrete(timesteps=timesteps)

    key = jax.random.PRNGKey(0)
    B = 8
    t_norm = jax.random.uniform(key, (B, 1), dtype=jnp.float32)

    # forward with t_normalized
    out = jax.block_until_ready(sched(t_normalized=t_norm))
    t_idx = jnp.round(t_norm * timesteps).astype(jnp.int32)[:, 0]
    ref = sched.betas[t_idx].reshape(B, 1)
    assert out.shape == (B, 1) and out.dtype == jnp.float32
    assert jnp.allclose(out, ref, atol=1e-6), (out, ref)

    # forward with t_int
    t_int = jax.random.randint(jax.random.PRNGKey(1), (B, 1), 0, timesteps + 1)
    out2 = jax.block_until_ready(sched(t_int=t_int))
    ref2 = sched.betas[t_int[:, 0]].reshape(B, 1)
    assert jnp.allclose(out2, ref2, atol=1e-6)

    # get_alpha_bar path (same fused kernel, other column)
    ab = jax.block_until_ready(sched.get_alpha_bar(t_int=t_int))
    ref_ab = sched.alphas_bar[t_int[:, 0]].reshape(B, 1)
    assert jnp.allclose(ab, ref_ab, atol=1e-6)

    # fused single-launch path returning both schedules
    beta_f, ab_f = sched.get_beta_and_alpha_bar(t_normalized=t_norm)
    jax.block_until_ready((beta_f, ab_f))
    assert jnp.allclose(beta_f, ref, atol=1e-6)
    assert jnp.allclose(ab_f, sched.alphas_bar[t_idx].reshape(B, 1), atol=1e-6)

    # large-batch (batch-tiled grid) path
    Bl = 2048
    t_big = jax.random.uniform(jax.random.PRNGKey(2), (Bl,), dtype=jnp.float32)
    out_big = jax.block_until_ready(sched(t_normalized=t_big))
    idx_big = jnp.round(t_big * timesteps).astype(jnp.int32)
    assert out_big.shape == (Bl,)
    assert jnp.allclose(out_big, sched.betas[idx_big], atol=1e-6)

    print("KERNEL_OK")
</pallas_src>

<mosaic_0001>
module attributes {stable_mosaic.version = 11 : i64} {
  func.func @_fused_lookup_kernel(%arg0: memref<8x1xf32, #tpu.memory_space<vmem>>, %arg1: memref<2x512xf32, #tpu.memory_space<vmem>>, %arg2: memref<8x2xf32, #tpu.memory_space<vmem>>) attributes {dimension_semantics = [], scalar_prefetch = 0 : i64, scratch_operands = 0 : i64, tpu.core_type = #tpu.core_type<tc>} {
    %c0 = arith.constant 0 : index
    %c0_0 = arith.constant 0 : index
    %0 = vector.load %arg0[%c0, %c0_0] : memref<8x1xf32, #tpu.memory_space<vmem>>, vector<8x1xf32>
    %cst = arith.constant 5.000000e+02 : f32
    %1 = vector.broadcast %cst : f32 to vector<8x1xf32>
    %2 = arith.mulf %0, %1 : vector<8x1xf32>
    %3 = math.roundeven %2 : vector<8x1xf32>
    %4 = arith.fptosi %3 : vector<8x1xf32> to vector<8x1xi32>
    %c0_i32 = arith.constant 0 : i32
    %c500_i32 = arith.constant 500 : i32
    %5 = vector.broadcast %c0_i32 : i32 to vector<8x1xi32>
    %6 = arith.maxsi %5, %4 : vector<8x1xi32>
    %7 = vector.broadcast %c500_i32 : i32 to vector<8x1xi32>
    %8 = arith.minsi %7, %6 : vector<8x1xi32>
    %9 = tpu.iota {dimensions = array<i32: 1>} : vector<1x512xi32>
    %10 = vector.broadcast %9 : vector<1x512xi32> to vector<8x512xi32>
    %11 = vector.broadcast %8 : vector<8x1xi32> to vector<8x512xi32>
    %12 = arith.cmpi eq, %10, %11 : vector<8x512xi32>
    %c0_1 = arith.constant 0 : index
    %c0_2 = arith.constant 0 : index
    %13 = vector.load %arg1[%c0_1, %c0_2] : memref<2x512xf32, #tpu.memory_space<vmem>>, vector<1x512xf32>
    %cst_3 = arith.constant 0.000000e+00 : f32
    %14 = vector.shape_cast %13 : vector<1x512xf32> to vector<1x512xf32>
    %15 = vector.broadcast %14 : vector<1x512xf32> to vector<8x512xf32>
    %16 = vector.broadcast %cst_3 : f32 to vector<8x512xf32>
    %17 = arith.select %12, %15, %16 : vector<8x512xi1>, vector<8x512xf32>
    %cst_4 = arith.constant dense<0.000000e+00> : vector<8xf32>
    %18 = vector.multi_reduction <add>, %17, %cst_4 [1] : vector<8x512xf32> to vector<8xf32>
    %19 = vector.shape_cast %18 : vector<8xf32> to vector<8x1xf32>
    %c1 = arith.constant 1 : index
    %c0_5 = arith.constant 0 : index
    %20 = vector.load %arg1[%c1, %c0_5] : memref<2x512xf32, #tpu.memory_space<vmem>>, vector<1x512xf32>
    %cst_6 = arith.constant 0.000000e+00 : f32
    %21 = vector.shape_cast %20 : vector<1x512xf32> to vector<1x512xf32>
    %22 = vector.broadcast %21 : vector<1x512xf32> to vector<8x512xf32>
    %23 = vector.broadcast %cst_6 : f32 to vector<8x512xf32>
    %24 = arith.select %12, %22, %23 : vector<8x512xi1>, vector<8x512xf32>
    %cst_7 = arith.constant dense<0.000000e+00> : vector<8xf32>
    %25 = vector.multi_reduction <add>, %24, %cst_7 [1] : vector<8x512xf32> to vector<8xf32>
    %26 = vector.shape_cast %25 : vector<8xf32> to vector<8x1xf32>
    %27 = tpu.concatenate %19, %26 in 1 : vector<8x1xf32>, vector<8x1xf32> -> vector<8x2xf32>
    %c0_8 = arith.constant 0 : index
    %c0_9 = arith.constant 0 : index
    %28 = vector.load %arg2[%c0_8, %c0_9] : memref<8x2xf32, #tpu.memory_space<vmem>>, vector<8x2xf32>
    tpu.vector_store %arg2[%c0_8, %c0_9], %27 {strides = array<i32>} : memref<8x2xf32, #tpu.memory_space<vmem>>, vector<8x2xf32>,
    return
  }
}

</mosaic_0001>

<bundles_post_ra>
// kernel: _schedule_lookup.1
= control target key start
LH: loop header
LB: loop body
LE: loop exit
PB: predicated region body
PF: predicated region fallthrough
CT: control target
= control target key end

     0   :  { %v83_v0 = vmov 0   ;;  %v18_v6 = vlaneseq  ;;  %vm69_vm6 = vcmask 7168   ;;  %vm71_vm7 = vcmask 15360   ;;  %s111_s0 = inlined_call_operand.vmem [shape: f32[8,1], index: 0, kind: input, shape index: {}]   ;;  %s112_s1 = inlined_call_operand.vmem [shape: f32[2,512], index: 1, kind: input, shape index: {}]   ;;  %s113_s2 = inlined_call_operand.vmem [shape: f32[8,2], index: 2, kind: output, shape index: {}]  }
   0x1   :  { %82 = vset.pattern.permute.xlu0 %v83_v0  ;;  %v11_v1 = vld [vmem:[%s111_s0] sm:$0xff] }
   0x2   :  { %v12_v2 = vmul.f32 500.0, %v11_v1  ;;  %v19_v7 = vand.u32 127, %v18_v6  ;;  %v77_v8 = vld [vmem:[%s112_s1 + $0x1] ss:$2 sm:$0xf] }
   0x3   :  { %v30_v9 = vld [vmem:[%s112_s1] ss:$2 sm:$0xf]  ;;  %v52_v12 = vperm.slane %v77_v8, 0  ;;  %v53_v13 = vperm.slane %v77_v8, 1  ;;  %v54_v18 = vperm.slane %v77_v8, 2 }
   0x4   :  { %v80_v3 = vcvt.f32.s32 %v12_v2  ;;  %v20_v10 = vadd.s32 128, %v19_v7  ;;  %v21_v11 = vadd.s32 256, %v19_v7  ;;  %v22_v14 = vadd.s32 384, %v19_v7 }
   0x5   :  { %v32_v15 = vperm.slane %v30_v9, 0  ;;  %v33_v16 = vperm.slane %v30_v9, 1  ;;  %v34_v19 = vperm.slane %v30_v9, 2  ;;  %v55_v20 = vperm.slane %v77_v8, 3 }
   0x6   :  { %vm14_vm0 = vcmp.gt.s32.totalorder %v80_v3, 0  ;;  %v35_v23 = vperm.slane %v30_v9, 3 }
   0x7   :  { %v15_v4 = vsel %vm14_vm0, %v80_v3, 0 }
   0x8   :  { %vm16_vm1 = vcmp.lt.s32.totalorder %v15_v4, 500 }
   0x9   :  { %v17_v5 = vsel %vm16_vm1, %v15_v4, 500 }
   0xa   :  { %24 = vperm.xlu0 %82, %v17_v5  }
  0x7c   :  { %v25_v17 = vpop.permute.xlu0 %24 }
  0x7d   :  { %vm26_vm2 = vcmp.eq.s32.totalorder %v19_v7, %v25_v17  ;;  %vm27_vm3 = vcmp.eq.s32.totalorder %v20_v10, %v25_v17  ;;  %vm28_vm4 = vcmp.eq.s32.totalorder %v21_v11, %v25_v17  ;;  %vm29_vm5 = vcmp.eq.s32.totalorder %v22_v14, %v25_v17 }
  0x7e   :  { %v60_v21 = vsel %vm26_vm2, %v52_v12, 0.0  ;;  %v61_v22 = vsel %vm27_vm3, %v53_v13, 0.0  ;;  %v40_v25 = vsel %vm26_vm2, %v32_v15, 0.0  ;;  %v41_v26 = vsel %vm27_vm3, %v33_v16, 0.0 }
  0x7f   :  { %v64_v24 = vadd.f32 %v61_v22, %v60_v21  ;;  %v62_v27 = vsel %vm28_vm4, %v54_v18, 0.0  ;;  %v44_v28 = vadd.f32 %v41_v26, %v40_v25  ;;  %v42_v30 = vsel %vm28_vm4, %v34_v19, 0.0 }
  0x80   :  { %v63_v31 = vsel %vm29_vm5, %v55_v20, 0.0  ;;  %v43_v34 = vsel %vm29_vm5, %v35_v23, 0.0 }
  0x81   :  { %v65_v29 = vadd.f32 %v64_v24, %v62_v27  ;;  %v45_v32 = vadd.f32 %v44_v28, %v42_v30 }
  0x83   :  { %v66_v33 = vadd.f32 %v65_v29, %v63_v31  ;;  %v46_v35 = vadd.f32 %v45_v32, %v43_v34 }
  0x85   :  { %67 = vadd.xlane.f32.xlu1 %v66_v33  ;;  %47 = vadd.xlane.f32.xlu0 %v46_v35 }
  0xf8   :  { %v68_v36 = vpop.xlane.xlu1 %67  ;;  %v48_v37 = vpop.xlane.xlu0 %47 }
  0xf9   :  { %v70_v38 = vsel %vm69_vm6, %v48_v37, %v68_v36 }
  0xfa   :  { %72 = vst.msk [vmem:[%s113_s2] sm:$0xff] %vm71_vm7, %v70_v38 }

</bundles_post_ra>
